<compile_context>
chip_gen: v7x
topology: tpu7x:2x2x1
jax: 0.10.0
libtpu: 0.0.40
codegen_flags: <defaults>
</compile_context>

<pallas_src>
import jax
import jax.numpy as jnp
from jax.experimental import pallas as pl
from jax.experimental.pallas import tpu as pltpu


def _num_embedding_kernel(x_ref, e_ref, w_ref, b_ref, o_ref):
    # x_ref: (TB, TN)   e_ref: (TN, TF) 0/1 expansion   w_ref/b_ref: (1, TF)
    # o_ref: (TB, TF)   with TF = TN * D  (lane-dense, multiple of 128)
    #
    # x @ E replicates each x[b, n] across its D contiguous output lanes on
    # the MXU (idle otherwise); w/b broadcast over TB is a cheap sublane
    # broadcast.  Everything stays in f32.
    xb = jnp.dot(
        x_ref[...],
        e_ref[...],
        precision=jax.lax.Precision.HIGHEST,
        preferred_element_type=jnp.float32,
    )
    o_ref[...] = (xb * w_ref[...] + b_ref[...]).astype(o_ref.dtype)


def _choose_tiles(B, N, D, itemsize, budget_bytes, min_grid_steps=8):
    """Pick (TB, TN): batch rows and features per block."""
    ND = N * D

    # Feature tiling: keep the full flattened table resident when it fits
    # comfortably; otherwise tile in multiples of 128 features so the x / w /
    # out blocks stay (8, 128)-aligned.
    TN = N
    if N % 128 == 0 and 2 * ND * itemsize > budget_bytes // 4:
        TN = 128
        while (N % (2 * TN) == 0) and (4 * TN * D * itemsize) <= budget_bytes // 4:
            TN *= 2
    TF = TN * D

    # Batch tiling: largest TB whose double-buffered x/out blocks (plus the
    # resident expansion / weight / bias blocks) fit the VMEM budget.
    fixed = (2 * TN * TF + 2 * 2 * TF) * itemsize      # E + w + b (x2 buffers)
    per_row = 2 * (TN + TF) * itemsize                 # x + out rows (x2 buffers)
    TB = max(8, (budget_bytes - fixed) // per_row)
    if TB >= B:
        TB = B
    else:
        # Keep >= min_grid_steps batch blocks (when B is large enough) so both
        # v7x TensorCores get work under the "parallel" batch axis.
        if B >= min_grid_steps * 8:
            TB = min(TB, max(8, B // min_grid_steps))
        TB = max(8, (TB // 8) * 8)                     # sublane-aligned blocks
    return int(TB), int(TN)


def num_embedding(x, weights, biases, *, vmem_budget_bytes=20 * 1024 * 1024):
    B, N = x.shape
    Nw, D = weights.shape
    assert N == Nw and biases.shape == (N, D)
    dtype = x.dtype
    itemsize = jnp.dtype(dtype).itemsize
    ND = N * D

    TB, TN = _choose_tiles(B, N, D, itemsize, vmem_budget_bytes)
    TF = TN * D

    # Flatten (N, D) -> (1, N*D); flat column n*D + d  <->  (n, d).
    w_flat = weights.reshape(1, ND)
    b_flat = biases.reshape(1, ND)

    # Constant 0/1 expansion matrix: local feature n owns columns [n*D, (n+1)*D).
    rows = jnp.arange(TN, dtype=jnp.int32)[:, None]
    cols = jnp.arange(TF, dtype=jnp.int32)[None, :] // D
    expand = (rows == cols).astype(dtype)              # (TN, TF)

    grid = (pl.cdiv(B, TB), pl.cdiv(ND, TF))

    out_flat = pl.pallas_call(
        _num_embedding_kernel,
        out_shape=jax.ShapeDtypeStruct((B, ND), dtype),
        grid_spec=pltpu.PrefetchScalarGridSpec(
            num_scalar_prefetch=0,
            grid=grid,
            in_specs=[
                pl.BlockSpec((TB, TN), lambda i, j: (i, j)),   # x rows / feature slice
                pl.BlockSpec((TN, TF), lambda i, j: (0, 0)),   # expansion (resident)
                pl.BlockSpec((1, TF), lambda i, j: (0, j)),    # flat weights
                pl.BlockSpec((1, TF), lambda i, j: (0, j)),    # flat biases
            ],
            out_specs=pl.BlockSpec((TB, TF), lambda i, j: (i, j)),
        ),
        compiler_params=pltpu.CompilerParams(
            dimension_semantics=("parallel", "parallel"),
            vmem_limit_bytes=32 * 1024 * 1024,
        ),
        cost_estimate=pl.CostEstimate(
            flops=2 * B * N * ND + 2 * B * ND,
            transcendentals=0,
            bytes_accessed=(B * ND + B * N + 2 * ND + TN * TF) * itemsize,
        ),
    )(x, expand, w_flat, b_flat)

    # Free view: (B, N*D) and (B, N, D) share the same row-major layout.
    return out_flat.reshape(B, N, D)


if __name__ == "__main__":
    # Small shapes consistent with the module: batch=2, num_features=8, dim=32.
    B, N, D = 2, 8, 32

    key = jax.random.PRNGKey(0)
    kx, kw, kb = jax.random.split(key, 3)

    x = jax.random.normal(kx, (B, N), dtype=jnp.float32)
    weights = jax.random.normal(kw, (N, D), dtype=jnp.float32)
    biases = jax.random.normal(kb, (N, D), dtype=jnp.float32)

    out = jax.block_until_ready(num_embedding(x, weights, biases))

    ref = x[:, :, None] * weights[None, :, :] + biases[None, :, :]
    assert out.shape == (B, N, D)
    assert jnp.allclose(out, ref, atol=1e-5, rtol=1e-5), "mismatch vs reference"

    print("KERNEL_OK")
</pallas_src>

<mosaic_0001>
module attributes {stable_mosaic.version = 11 : i64} {
  func.func @_num_embedding_kernel(%arg0: i32, %arg1: i32, %arg2: memref<2x8xf32, #tpu.memory_space<vmem>>, %arg3: memref<8x256xf32, #tpu.memory_space<vmem>>, %arg4: memref<1x256xf32, #tpu.memory_space<vmem>>, %arg5: memref<1x256xf32, #tpu.memory_space<vmem>>, %arg6: memref<2x256xf32, #tpu.memory_space<vmem>>) attributes {dimension_semantics = [#tpu.dimension_semantics<parallel>, #tpu.dimension_semantics<parallel>], iteration_bounds = array<i64: 1, 1>, scalar_prefetch = 0 : i64, scratch_operands = 0 : i64, tpu.core_type = #tpu.core_type<tc>, window_params = [{transform_indices = @transform_0, window_bounds = array<i64: 2, 8>}, {pipeline_mode = #tpu.pipeline_mode<synchronous>, transform_indices = @transform_1, window_bounds = array<i64: 8, 256>}, {transform_indices = @transform_2, window_bounds = array<i64: 1, 256>}, {transform_indices = @transform_3, window_bounds = array<i64: 1, 256>}, {transform_indices = @transform_4, window_bounds = array<i64: 2, 256>}]} {
    %c0 = arith.constant 0 : index
    %c0_0 = arith.constant 0 : index
    %0 = vector.load %arg2[%c0, %c0_0] : memref<2x8xf32, #tpu.memory_space<vmem>>, vector<2x8xf32>
    %c0_1 = arith.constant 0 : index
    %c0_2 = arith.constant 0 : index
    %1 = vector.load %arg3[%c0_1, %c0_2] : memref<8x256xf32, #tpu.memory_space<vmem>>, vector<8x256xf32>
    %cst = arith.constant dense<0.000000e+00> : vector<2x256xf32>
    %2 = tpu.matmul %0, %1, %cst {dimension_numbers = #tpu.dot_dimension_numbers<[1], [0], [0], [1], [0, 0, 1, 1], [], []>, precision = #tpu.contract_precision<fp32>} : vector<2x8xf32>, vector<8x256xf32>, vector<2x256xf32> -> vector<2x256xf32>
    %c0_3 = arith.constant 0 : index
    %c0_4 = arith.constant 0 : index
    %3 = vector.load %arg4[%c0_3, %c0_4] : memref<1x256xf32, #tpu.memory_space<vmem>>, vector<1x256xf32>
    %4 = vector.broadcast %3 : vector<1x256xf32> to vector<2x256xf32>
    %5 = arith.mulf %2, %4 : vector<2x256xf32>
    %c0_5 = arith.constant 0 : index
    %c0_6 = arith.constant 0 : index
    %6 = vector.load %arg5[%c0_5, %c0_6] : memref<1x256xf32, #tpu.memory_space<vmem>>, vector<1x256xf32>
    %7 = vector.broadcast %6 : vector<1x256xf32> to vector<2x256xf32>
    %8 = arith.addf %5, %7 : vector<2x256xf32>
    %c0_7 = arith.constant 0 : index
    %c0_8 = arith.constant 0 : index
    %9 = vector.load %arg6[%c0_7, %c0_8] : memref<2x256xf32, #tpu.memory_space<vmem>>, vector<2x256xf32>
    tpu.vector_store %arg6[%c0_7, %c0_8], %8 {strides = array<i32>} : memref<2x256xf32, #tpu.memory_space<vmem>>, vector<2x256xf32>,
    return
  }
  func.func @transform_0(%arg0: i32, %arg1: i32) -> (i32, i32) {
    %c0_i32 = arith.constant 0 : i32
    return %arg0, %arg1 : i32, i32
  }
  func.func @transform_1(%arg0: i32, %arg1: i32) -> (i32, i32) {
    %c0_i32 = arith.constant 0 : i32
    %c0_i32_0 = arith.constant 0 : i32
    %c0_i32_1 = arith.constant 0 : i32
    return %c0_i32, %c0_i32_0 : i32, i32
  }
  func.func @transform_2(%arg0: i32, %arg1: i32) -> (i32, i32) {
    %c0_i32 = arith.constant 0 : i32
    %c0_i32_0 = arith.constant 0 : i32
    return %c0_i32, %arg1 : i32, i32
  }
  func.func @transform_3(%arg0: i32, %arg1: i32) -> (i32, i32) {
    %c0_i32 = arith.constant 0 : i32
    %c0_i32_0 = arith.constant 0 : i32
    return %c0_i32, %arg1 : i32, i32
  }
  func.func @transform_4(%arg0: i32, %arg1: i32) -> (i32, i32) {
    %c0_i32 = arith.constant 0 : i32
    return %arg0, %arg1 : i32, i32
  }
}

</mosaic_0001>

<bundles_post_ra>
// kernel: tpu_custom_call.1
= control target key start
LH: loop header
LB: loop body
LE: loop exit
PB: predicated region body
PF: predicated region fallthrough
CT: control target
= control target key end

     0   :  { %9 = vsyncpa [#allocation3], 0  ;;  %s728_s0 = inlined_call_operand.hbm [shape: f32[2,8], index: 0, kind: input, shape index: {}]   ;;  %s729_s1 = inlined_call_operand.hbm [shape: f32[8,256], index: 1, kind: input, shape index: {}]   ;;  %s730_s2 = inlined_call_operand.vmem [shape: f32[1,256], index: 2, kind: input, shape index: {}]   ;;  %s731_s3 = inlined_call_operand.vmem [shape: f32[1,256], index: 3, kind: input, shape index: {}]   ;;  %s732_s4 = inlined_call_operand.hbm [shape: f32[2,256], index: 4, kind: output, shape index: {}]  }
   0x1   :  { %10 = vsyncpa [#allocation6], 0 }
   0x2   :  { %11 = vsyncpa [#allocation4], 0  ;;  %s657_s15 = smov [#allocation2]   ;;  %s658_s17 = smov [#allocation5]  }
   0x3   :  { %s18_s16 = sshll.u32 %s657_s15, 4  ;;  %s28_s18 = sshll.u32 %s658_s17, 4  ;;  %s19_s16 = int_to_ptr.vmem [resolvable:$true] %s18_s16  ;;  %s29_s18 = int_to_ptr.vmem [resolvable:$true] %s28_s18 }
   0x4   :  { %s585_s21 = scalar_lea.hbm %s728_s0, 32 }
   0x5   :  { %p586_p0 = scmp.ne.s32.totalorder %s728_s0, %s585_s21  ;;  %p589_p1 = scmp.lt.u32.totalorder %s585_s21, %s728_s0 }
   0x7   :  { %p591_p2 = pnand %p589_p1, %p586_p0 }
   0x9   :  { %594 = shalt.err (!%p591_p2)
}
   0xa   :  { %s595_s26 = scalar_lea.vmem %s19_s16, 32  ;;  %p600_p4 = scmp.lt.s32.totalorder %s19_s16, %s19_s16 }
   0xb   :  { %p596_p3 = scmp.ne.s32.totalorder %s19_s16, %s595_s26  ;;  %p601_p5 = scmp.lt.s32.totalorder %s595_s26, %s595_s26 }
   0xd   :  { %p602_p6 = por %p601_p5, %p600_p4 }
   0xf   :  { %p603_p7 = pnand %p602_p6, %p596_p3 }
  0x11   :  { %606 = shalt.err (!%p603_p7)
}
  0x12   :  { %21 = dma.hbm_to_vmem [thread:$0]  %s728_s0, 32, %s19_s16, [#allocation3]  }
  0x13   :  { %s607_s5 = scalar_lea.hbm %s729_s1, 256 }
  0x14   :  { %p608_p8 = scmp.ne.s32.totalorder %s729_s1, %s607_s5  ;;  %p611_p9 = scmp.lt.u32.totalorder %s607_s5, %s729_s1 }
  0x16   :  { %p613_p10 = pnand %p611_p9, %p608_p8 }
  0x18   :  { %616 = shalt.err (!%p613_p10)
}
  0x19   :  { %s617_s10 = scalar_lea.vmem %s29_s18, 256  ;;  %p622_p12 = scmp.lt.s32.totalorder %s29_s18, %s29_s18 }
  0x1a   :  { %p618_p11 = scmp.ne.s32.totalorder %s29_s18, %s617_s10  ;;  %p623_p13 = scmp.lt.s32.totalorder %s617_s10, %s617_s10 }
  0x1c   :  { %p624_p0 = por %p623_p13, %p622_p12 }
  0x1e   :  { %p625_p1 = pnand %p624_p0, %p618_p11 }
  0x20   :  { %628 = shalt.err (!%p625_p1)
}
  0x21   :  { %31 = dma.hbm_to_vmem [thread:$0]  %s729_s1, 256, %s29_s18, [#allocation6]  }
  0x22   :  { %651 = dma.done.wait [#allocation3], 32  }
  0x23   :  { %652 = vsyncadd [#allocation3], 4294967264 }
  0x24   :  { %653 = dma.done.wait [#allocation6], 256  }
  0x25   :  { %654 = vsyncadd [#allocation6], 4294967040  ;;  %v659_v0 = vmov 0.0   ;;  %vm45_vm0 = vcmask 64512   ;;  %v44_v1 = vld [vmem:[#allocation5 + $0x8] sm:$0xff]  ;;  %v43_v2 = vld [vmem:[#allocation5] sm:$0xff]  ;;  %v516_v20 = vlaneseq }
  0x26   :  { %352 = vmatprep.mubr.f32.mxu0 %v659_v0  ;;  %115 = vmatprep.mubr.f32.mxu1 %v659_v0  ;;  %v42_v3 = vld [vmem:[#allocation2] sm:$0x3]  ;;  %v49_v4 = vand.u32 4294901760, %v44_v1  ;;  %v51_v5 = vand.u32 4294901760, %v43_v2  ;;  %s660_s15 = smov [#allocation7]  }
  0x27   :  { %v47_v6 = vsel %vm45_vm0, %v42_v3, 0  ;;  %v517_v21 = vshrl.u32 %v516_v20, 7  ;;  %v514_v24 = vld [vmem:[%s730_s2] sm:$0x3]  ;;  %s560_s16 = sshll.u32 %s660_s15, 4  ;;  %s561_s16 = int_to_ptr.vmem [resolvable:$true] %s560_s16 }
  0x28   :  { %v116_v7 = vand.u32 4294901760, %v47_v6  ;;  %287 = vmatprep.subr.mxu0 %v49_v4  ;;  %v134_v8 = vsub.f32 %v43_v2, %v51_v5  ;;  %50 = vmatprep.subr.mxu1 %v49_v4  ;;  %v128_v9 = vsub.f32 %v44_v1, %v49_v4  ;;  %v528_v27 = vld [vmem:[%s731_s3] sm:$0x3]  ;;  %s629_s2 = scalar_lea.vmem %s561_s16, 64  ;;  %p634_p3 = scmp.lt.s32.totalorder %s561_s16, %s561_s16 }
  0x29   :  { %289 = vmatpush1.msra.mxu0 %v51_v5  ;;  %52 = vmatpush1.msra.mxu1 %v51_v5  ;;  %v518_v22 = vsub.s32 0, %v517_v21  ;;  %v522_v25 = vsub.s32 1, %v517_v21  ;;  %p630_p2 = scmp.ne.s32.totalorder %s561_s16, %s629_s2  ;;  %p635_p4 = scmp.lt.s32.totalorder %s629_s2, %s629_s2 }
  0x2a   :  { %v117_v10 = vsub.f32 %v47_v6, %v116_v7  ;;  %v129_v11 = vand.u32 4294901760, %v128_v9  ;;  %v135_v12 = vand.u32 4294901760, %v134_v8 }
  0x2b   :  { %v519_v28 = vrot.slane %v514_v24, %v518_v22  ;;  %v523_v30 = vrot.slane %v514_v24, %v522_v25  ;;  %v533_v32 = vrot.slane %v528_v27, %v518_v22  ;;  %v537_v35 = vrot.slane %v528_v27, %v522_v25  ;;  %p636_p5 = por %p635_p4, %p634_p3 }
  0x2c   :  { %v118_v13 = vand.u32 4294901760, %v117_v10  ;;  %v130_v14 = vsub.f32 %v128_v9, %v129_v11  ;;  %365 = vmatprep.subr.mxu0 %v129_v11  ;;  %v136_v15 = vsub.f32 %v134_v8, %v135_v12 }
  0x2d   :  { %p637_p6 = pnand %p636_p5, %p630_p2 }
  0x2e   :  { %356 = vmatmul.mubr.f32.vlgmr.msra.gmra.mrb[0].mxu0 %v118_v13  ;;  %v119_v16 = vsub.f32 %v117_v10, %v118_v13  ;;  %v131_v17 = vand.u32 4294901760, %v130_v14  ;;  %v137_v18 = vand.u32 4294901760, %v136_v15 }
  0x2f   :  { %369 = vmatpush1.msra.mxu0 %v135_v12  ;;  %432 = vmatprep.mubr.f32.mxu0 %v659_v0 }
  0x30   :  { %v120_v19 = vand.u32 4294901760, %v119_v16  ;;  %441 = vmatprep.subr.mxu0 %v49_v4  ;;  %132 = vmatprep.subr.mxu1 %v131_v17 }
  0x32   :  { %121 = vmatmul.mubr.f32.vlgmr.msra.gmra.mrb[0].mxu1 %v120_v19 }
  0x33   :  { %138 = vmatpush1.msra.mxu1 %v137_v18  ;;  %201 = vmatprep.mubr.f32.mxu1 %v659_v0 }
  0x34   :  { %211 = vmatprep.subr.mxu1 %v128_v9 }
  0x36   :  { %434 = vmatmul.mubr.f32.vlgmr.msra.gmra.mrb[0].mxu0 %v116_v7 }
  0x37   :  { %443 = vmatpush1.msra.mxu0 %v51_v5  ;;  %506 = vmatprep.mubr.f32.mxu0 %v659_v0 }
  0x3a   :  { %203 = vmatmul.mubr.f32.vlgmr.msra.gmra.mrb[0].mxu1 %v116_v7 }
  0x3b   :  { %214 = vmatpush1.msra.mxu1 %v134_v8  ;;  %277 = vmatprep.mubr.f32.mxu1 %v659_v0 }
  0x3e   :  { %508 = vmatmul.mubr.f32.vlgmr.msra.gmra.mrb[0].mxu0 %v116_v7 }
  0x42   :  { %280 = vmatmul.mubr.f32.vlgmr.msra.gmra.mrb[0].mxu1 %v117_v10 }
 0x111   :  { %v509_v23 = vpop.f32.mrb[0].mxu0 }
 0x112   :  { %v511_v26 = vpop.f32.mrb[1].mxu0 }
 0x115   :  { %v281_v29 = vpop.f32.mrb[0].mxu1 }
 0x116   :  { %v571_v31 = vadd.f32 %v509_v23, %v281_v29  ;;  %v283_v33 = vpop.f32.mrb[1].mxu1 }
 0x117   :  { %v572_v34 = vadd.f32 %v511_v26, %v283_v33 }
 0x118   :  { %v526_v36 = vmul.f32 %v571_v31, %v519_v28 }
 0x119   :  { %v527_v37 = vmul.f32 %v572_v34, %v523_v30 }
 0x11a   :  { %v540_v38 = vadd.f32 %v533_v32, %v526_v36 }
 0x11b   :  { %v541_v39 = vadd.f32 %v537_v35, %v527_v37 }
 0x11d   :  { %v544_v40 = vcombine.low %v540_v38, %v541_v39 }
 0x11f   :  { %570 = vst.sshfl [vmem:[#allocation7] sm:$0x33 pattern:$0x76325410] %v544_v40 }
 0x120   :  { %640 = shalt.err (!%p637_p6)
}
 0x121   :  { %s641_s18 = scalar_lea.hbm %s732_s4, 64 }
 0x122   :  { %p642_p7 = scmp.ne.s32.totalorder %s732_s4, %s641_s18  ;;  %p645_p8 = scmp.lt.u32.totalorder %s641_s18, %s732_s4 }
 0x124   :  { %p647_p9 = pnand %p645_p8, %p642_p7 }
 0x126   :  { %650 = shalt.err (!%p647_p9)
}
 0x127   :  { %563 = dma.vmem_to_hbm [thread:$0]  %s561_s16, 64, %s732_s4, [#allocation4]  }
 0x128   :  { %655 = dma.done.wait [#allocation4], 64  }
 0x129   :  { %656 = vsyncadd [#allocation4], 4294967232 }
 0x12a   :  { %567 = vsyncpa [#allocation3], 1 }
 0x12b   :  { %568 = vsyncpa [#allocation6], 1 }
 0x12c   :  { %569 = vsyncpa [#allocation4], 1 }

</bundles_post_ra>
